<compile_context>
chip_gen: v6e
topology: v6e:2x2x1
jax: 0.10.0
libtpu: 0.0.40
codegen_flags: <defaults>
</compile_context>

<pallas_src>
import math

import numpy as np
import jax
import jax.numpy as jnp
from jax.experimental import pallas as pl
from jax.experimental.pallas import tpu as pltpu

BN_EPS = 1e-5


def _round_up(x, m):
    return (x + m - 1) // m * m


def _vmem_cap_bytes():
    """Generation-aware scoped-VMEM budget (~5/8 of physical per-core VMEM)."""
    try:
        phys = getattr(pltpu.get_tpu_info(), "vmem_capacity_bytes", None)
    except Exception:                      # not on TPU / older runtime
        phys = None
    if not phys:
        phys = 128 << 20
    # ~40 MiB on v7x (64 MiB / TensorCore), ~80 MiB on v5e/v6e (128 MiB).
    return int(phys) * 5 // 8


def _choose_pair_tile(n_pairs, wp, tp_target, requested):
    """Pooled-row pairs per block (Tp) and the (possibly padded) pair count.

    Keeps Tp*wp a multiple of 8 sublanes (unmasked output stores) and, in the
    auto path, a multiple of 256 when affordable (full v6e/v7x MXU tiles).
    Prefers an exact divisor of n_pairs near the target so no zero-padding
    (an extra HBM copy of x) is needed; padding is the fallback — never a
    full-extent block that could exceed the VMEM budget.
    """
    step8 = 8 // math.gcd(8, wp)
    if requested is not None:
        tp = max(1, min(int(requested), n_pairs))
        if tp < n_pairs:
            if tp >= step8:
                tp = (tp // step8) * step8
            else:
                tp = min(step8, n_pairs)
        return tp, _round_up(n_pairs, tp)

    tp = max(1, min(int(tp_target), n_pairs))
    if tp < n_pairs:
        for align in (256, 8):             # MXU tile first, 8 sublanes at least
            step = align // math.gcd(align, wp)
            if tp >= step:
                tp = (tp // step) * step
                break
        else:
            tp = min(step8, n_pairs)       # pathological tiny budget
    if tp >= n_pairs:
        return n_pairs, n_pairs            # fits in one block (budget-checked)
    # Exact divisor near the target avoids the jnp.pad HBM copy of x; trading
    # the 256-alignment for that is the right call on an HBM-bound op.
    for cand in range(tp, max(tp // 2, 1) - 1, -1):
        if n_pairs % cand == 0 and (cand * wp) % 8 == 0:
            return cand, n_pairs
    return tp, _round_up(n_pairs, tp)


# ---------------------------------------------------------------------------
# Pass 1: per-channel sum / sum-of-squares (training-mode BN statistics).
# Grid (n_split, blocks_per_split): axis 0 "parallel" (v7x: one split per
# TensorCore, each with its own accumulator row), axis 1 "arbitrary" streams
# row tiles into the resident accumulator.
# ---------------------------------------------------------------------------
def _bn_stats_kernel(x_ref, sum_ref, sq_ref):
    # x_ref:   (Tp, 2, Wp, 2C) f32 activation tile
    # sum_ref: (1, 1, 2C) f32 running sum    (resident across grid axis 1)
    # sq_ref:  (1, 1, 2C) f32 running sumsq  (resident across grid axis 1)
    @pl.when(pl.program_id(1) == 0)
    def _():
        sum_ref[...] = jnp.zeros_like(sum_ref)
        sq_ref[...] = jnp.zeros_like(sq_ref)

    x = x_ref[...]
    # Reduce the leading (row-pair, h-parity) axes on the VPU first, then the
    # sublane (Wp) axis — no flattening reshape, so no VMEM relayout copy.
    s = jnp.sum(x, axis=(0, 1))            # (Wp, 2C)
    q = jnp.sum(x * x, axis=(0, 1))        # (Wp, 2C)
    sum_ref[...] += jnp.sum(s, axis=0, keepdims=True)[None]
    sq_ref[...] += jnp.sum(q, axis=0, keepdims=True)[None]


# ---------------------------------------------------------------------------
# Pass 2: BN (folded scale/shift, pool scale pre-folded) + ReLU + 2x2 avg-pool
#         + 1x1 conv.
# ---------------------------------------------------------------------------
def _transition_kernel(x_ref, scale_ref, shift_ref, w_ref, o_ref):
    # x_ref:     (Tp, 2, Wp, 2C)  two H-rows per pooled row; lane = (w parity, C)
    # scale_ref: (1, 2C)  0.25 * gamma * rsqrt(var+eps), tiled on both lane halves
    # shift_ref: (1, 2C)  0.25 * (beta - mean*gamma*rsqrt(var+eps)), same tiling
    # w_ref:     (C, Cp)  1x1 conv weight (transposed, lane-padded)
    # o_ref:     (Tp*Wp, Cp)  pooled output rows, lane-dense
    x = x_ref[...]
    tp, _, wp, c2 = x.shape
    c = c2 // 2

    # BatchNorm folded to a single FMA + ReLU (the avg-pool's 1/4 is already in
    # scale/shift; ReLU is positively homogeneous so this commutes), f32 VPU.
    y = jnp.maximum(x * scale_ref[0] + shift_ref[0], 0.0)

    # 2x2 average pool = H-pair add (second axis) + W-pair add (lane halves).
    # The lane-half add is a clean vreg split only when C % 128 == 0 (true for
    # DenseNet transitions); other C still lower correctly via XLU shuffles.
    yh = y[:, 0] + y[:, 1]                        # (Tp, Wp, 2C)
    yp = yh[:, :, :c] + yh[:, :, c:]              # (Tp, Wp, C)

    # 1x1 conv == channel matmul on the MXU, f32 accumulation.  The flatten is
    # layout-free when Wp % 8 == 0 (wrapper keeps Tp*Wp a multiple of 8).
    a = yp.reshape(tp * wp, c).astype(w_ref.dtype)
    o_ref[...] = jnp.dot(a, w_ref[...],
                         preferred_element_type=jnp.float32).astype(o_ref.dtype)


def transition_forward(x, gamma, beta, conv_w, *,
                       matmul_dtype=jnp.bfloat16,
                       out_dtype=None,
                       pooled_rows_per_block=None,
                       data_format="NCHW"):
    """DenseNet Transition forward: avg_pool2d(conv1x1(relu(batchnorm(x))), 2).

    x: (N,C,H,W) if data_format=="NCHW" (PyTorch) or (N,H,W,C) if "NHWC".
    conv_w: (Cout, C, 1, 1).  Returns the pooled output in the same data_format.
    out_dtype: output dtype (default x's dtype); pass bf16 to halve the output
    HBM write when the downstream layer accepts it.

    NOTE: data_format="NCHW" pays an extra full HBM round-trip of x for the
    entry transpose (and ~10% more for the exit transpose) on this otherwise
    HBM-bound op; prefer "NHWC" end-to-end in the surrounding model.
    """
    if data_format == "NCHW":
        N, C, H, W = x.shape
        # TODO(synk): fuse the NCHW->NHWC layout change into pass 1/2 (in-kernel
        # XLU transpose of channel-major blocks) to avoid this HBM round-trip.
        x_nhwc = jnp.transpose(x, (0, 2, 3, 1))
    elif data_format == "NHWC":
        N, H, W, C = x.shape
        x_nhwc = x
    else:
        raise ValueError(f"unknown data_format {data_format!r}")

    Cout = conv_w.shape[0]
    # TODO(synk): odd H/W (PyTorch avg_pool2d floor-crops the last row/col) not
    # handled; DenseNet transitions always see even spatial dims.
    assert H % 2 == 0 and W % 2 == 0, "Transition expects even spatial dims"
    Hp, Wp = H // 2, W // 2
    C2 = 2 * C
    Cp = _round_up(max(Cout, 1), 128)             # lane-dense output channels

    f32 = jnp.float32
    if out_dtype is None:
        out_dtype = x_nhwc.dtype
    w_itemsize = jnp.dtype(matmul_dtype).itemsize
    out_itemsize = jnp.dtype(out_dtype).itemsize
    n_px, n_po = N * H * W, N * Hp * Wp

    # (N,H,W,C) -> (N*Hp, 2, Wp, 2*C): a pure row-major reshape (no data
    # movement); lane index = (w & 1)*C + c, H row-pairs stay intra-tile.
    x4d = x_nhwc.reshape(N * Hp, 2, Wp, C2)
    n_pairs = N * Hp

    # ---- generation-aware tile sizing -------------------------------------
    vmem_cap = _vmem_cap_bytes()
    w_bytes = C * Cp * w_itemsize
    x_bpp = 2 * Wp * C2 * 4                       # f32 activation bytes / row pair
    o_bpp = Wp * Cp * out_itemsize                # pooled output bytes / row pair
    # Double-buffered (x + out) blocks plus the double-buffered weight and
    # compiler scratch must fit under the cap; ~8 MiB per buffer is already at
    # the measured HBM-roofline knee, so cap the target there.  Both passes
    # share the block size (pass 1 holds only the x double-buffer, but >4 MiB
    # blocks are already at the roofline, so a single zero-pad/spec is simpler).
    pair_budget = max(1 << 20,
                      min(8 << 20, (vmem_cap - 2 * w_bytes - (8 << 20)) // 2))
    tp_target = max(1, pair_budget // (x_bpp + o_bpp))
    Tp, padded_pairs = _choose_pair_tile(n_pairs, Wp, tp_target,
                                         pooled_rows_per_block)
    if padded_pairs != n_pairs:
        # Zero rows contribute nothing to the stats and their output rows are
        # sliced off below; the pad itself costs one extra HBM copy of x.
        x4d = jnp.pad(x4d, ((0, padded_pairs - n_pairs), (0, 0), (0, 0), (0, 0)))
    n_blocks = padded_pairs // Tp

    x_blk = Tp * 2 * Wp * C2 * 4
    o_blk = Tp * Wp * Cp * out_itemsize

    # ---------------- pass 1: batch statistics ----------------
    # Split the row blocks across TensorCores (v7x has two): each split owns a
    # separate accumulator row; the wrapper reduces rows and lane halves.
    n_split = 2 if (n_blocks % 2 == 0 and n_blocks >= 2) else 1
    bps = n_blocks // n_split

    stats_cost = pl.CostEstimate(flops=3 * n_px * C, transcendentals=0,
                                 bytes_accessed=n_px * C * 4 + n_split * C2 * 8)
    sums, sqs = pl.pallas_call(
        _bn_stats_kernel,
        out_shape=(jax.ShapeDtypeStruct((n_split, 1, C2), f32),
                   jax.ShapeDtypeStruct((n_split, 1, C2), f32)),
        grid=(n_split, bps),
        in_specs=[pl.BlockSpec((Tp, 2, Wp, C2),
                               lambda p, i: (p * bps + i, 0, 0, 0))],
        out_specs=(pl.BlockSpec((1, 1, C2), lambda p, i: (p, 0, 0)),
                   pl.BlockSpec((1, 1, C2), lambda p, i: (p, 0, 0))),
        compiler_params=pltpu.CompilerParams(
            dimension_semantics=("parallel", "arbitrary"),
            vmem_limit_bytes=int(min(vmem_cap,
                                     max(16 << 20, 2 * x_blk + (2 << 20))))),
        cost_estimate=stats_cost,
    )(x4d)

    # Fold BN + the 2x2-pool scale into one per-channel FMA: y = x*scale + shift.
    cnt = float(n_px)                             # true element count (no padding)
    ch_sum = sums.reshape(n_split * 2, C).sum(axis=0)
    ch_sq = sqs.reshape(n_split * 2, C).sum(axis=0)
    mean = ch_sum / cnt
    # Biased (training-mode) variance.  E[x^2]-mean^2 in f32 can cancel badly
    # when |mean| >> std; clamp at 0 so rsqrt never sees a tiny negative.
    var = jnp.maximum(ch_sq / cnt - mean * mean, 0.0)
    scale = gamma.astype(f32) * jax.lax.rsqrt(var + BN_EPS)
    shift = beta.astype(f32) - mean * scale
    scale = scale * 0.25                          # fold avg-pool's 1/4 (exact)
    shift = shift * 0.25
    scale2 = jnp.concatenate([scale, scale]).reshape(1, C2)
    shift2 = jnp.concatenate([shift, shift]).reshape(1, C2)

    # 1x1 conv weight: (Cout,C,1,1) -> (C,Cout) -> lane-pad to (C,Cp), matmul dtype.
    w2 = conv_w.reshape(Cout, C).T.astype(matmul_dtype)
    w_pad = jnp.zeros((C, Cp), matmul_dtype).at[:, :Cout].set(w2)

    # ---------------- pass 2: fused BN/ReLU/pool/conv ----------------
    # TODO(synk): single-buffer the constant scale/shift/weight operands via
    # pipeline_mode=pl.Buffered(1) to save one VMEM copy of w (their blocks are
    # constant so they are only DMA'd once either way); kept default-buffered
    # here for lowering portability and accounted for in vmem_limit.
    vmem_limit = int(min(vmem_cap,
                         max(16 << 20,
                             2 * (x_blk + o_blk) + 2 * w_bytes
                             + 4 * C2 * 4 + (4 << 20))))
    main_cost = pl.CostEstimate(
        flops=3 * n_px * C + 3 * n_po * C + 2 * n_po * C * Cp,
        transcendentals=0,
        bytes_accessed=(n_px * C * 4 + n_po * Cp * out_itemsize
                        + C * Cp * w_itemsize + 2 * C2 * 4))

    out2d = pl.pallas_call(
        _transition_kernel,
        out_shape=jax.ShapeDtypeStruct((padded_pairs * Wp, Cp), out_dtype),
        grid=(n_blocks,),
        in_specs=[
            pl.BlockSpec((Tp, 2, Wp, C2), lambda i: (i, 0, 0, 0)),
            pl.BlockSpec((1, C2), lambda i: (0, 0)),
            pl.BlockSpec((1, C2), lambda i: (0, 0)),
            pl.BlockSpec((C, Cp), lambda i: (0, 0)),
        ],
        out_specs=pl.BlockSpec((Tp * Wp, Cp), lambda i: (i, 0)),
        compiler_params=pltpu.CompilerParams(
            dimension_semantics=("parallel",),    # shards tiles across v7x's 2 TCs
            vmem_limit_bytes=vmem_limit),
        cost_estimate=main_cost,
    )(x4d, scale2, shift2, w_pad)

    out_nhwc = out2d[:n_po, :Cout].reshape(N, Hp, Wp, Cout)
    if data_format == "NCHW":
        return jnp.transpose(out_nhwc, (0, 3, 1, 2))
    return out_nhwc


def _reference(x, gamma, beta, conv_w):
    """Pure-JAX reference mirroring the PyTorch forward (training-mode BN)."""
    mean = x.mean(axis=(0, 2, 3), keepdims=True)
    var = ((x - mean) ** 2).mean(axis=(0, 2, 3), keepdims=True)
    xn = (x - mean) / jnp.sqrt(var + BN_EPS)
    xn = xn * gamma.reshape(1, -1, 1, 1) + beta.reshape(1, -1, 1, 1)
    r = jnp.maximum(xn, 0.0)
    z = jnp.einsum("nchw,oc->nohw", r, conv_w.reshape(conv_w.shape[0], -1))
    n, co, h, w = z.shape
    return z.reshape(n, co, h // 2, 2, w // 2, 2).mean(axis=(3, 5))


if __name__ == "__main__":
    N, C, H, W = 2, 4, 16, 16     # nChannels = 4
    Cout = 2                      # nOutChannels = 2

    key = jax.random.PRNGKey(0)
    kx, kg, kb, kw = jax.random.split(key, 4)
    x = jax.random.normal(kx, (N, C, H, W), jnp.float32)
    gamma = 1.0 + 0.1 * jax.random.normal(kg, (C,), jnp.float32)   # BN weight
    beta = 0.1 * jax.random.normal(kb, (C,), jnp.float32)          # BN bias
    conv_w = 0.2 * jax.random.normal(kw, (Cout, C, 1, 1), jnp.float32)

    ref = _reference(x, gamma, beta, conv_w)

    # f32-MXU path, 4-block grid -> exercises the 2-way pass-1 TC split.
    out_f32 = jax.block_until_ready(
        transition_forward(x, gamma, beta, conv_w,
                           matmul_dtype=jnp.float32, pooled_rows_per_block=4))
    assert out_f32.shape == (N, Cout, H // 2, W // 2), out_f32.shape
    np.testing.assert_allclose(np.asarray(out_f32), np.asarray(ref),
                               rtol=1e-3, atol=1e-4)

    # default bf16-MXU path (v6e/v7x MXU-friendly).
    out_bf16 = jax.block_until_ready(
        transition_forward(x, gamma, beta, conv_w, pooled_rows_per_block=4))
    np.testing.assert_allclose(np.asarray(out_bf16), np.asarray(ref),
                               rtol=2e-2, atol=5e-3)

    # non-dividing tile -> zero-padded pair axis, odd block count (no split).
    out_pad = jax.block_until_ready(
        transition_forward(x, gamma, beta, conv_w,
                           matmul_dtype=jnp.float32, pooled_rows_per_block=6))
    np.testing.assert_allclose(np.asarray(out_pad), np.asarray(ref),
                               rtol=1e-3, atol=1e-4)

    # NHWC end-to-end (no wrapper transposes), auto tiling, bf16 output.
    x_nhwc = jnp.transpose(x, (0, 2, 3, 1))
    out_nhwc = jax.block_until_ready(
        transition_forward(x_nhwc, gamma, beta, conv_w,
                           data_format="NHWC", out_dtype=jnp.bfloat16))
    ref_nhwc = jnp.transpose(ref, (0, 2, 3, 1))
    np.testing.assert_allclose(np.asarray(out_nhwc, dtype=np.float32),
                               np.asarray(ref_nhwc), rtol=2e-2, atol=2e-2)

    print("KERNEL_OK")
</pallas_src>

<mosaic_0001>
module attributes {stable_mosaic.version = 11 : i64} {
  func.func @_bn_stats_kernel(%arg0: i32, %arg1: i32, %arg2: memref<4x2x8x8xf32, #tpu.memory_space<vmem>>, %arg3: memref<1x1x8xf32, #tpu.memory_space<vmem>>, %arg4: memref<1x1x8xf32, #tpu.memory_space<vmem>>) attributes {dimension_semantics = [#tpu.dimension_semantics<parallel>, #tpu.dimension_semantics<arbitrary>], iteration_bounds = array<i64: 2, 2>, scalar_prefetch = 0 : i64, scratch_operands = 0 : i64, tpu.core_type = #tpu.core_type<tc>, window_params = [{transform_indices = @transform_0, window_bounds = array<i64: 4, 2, 8, 8>}, {transform_indices = @transform_1, window_bounds = array<i64: 1, 1, 8>}, {transform_indices = @transform_2, window_bounds = array<i64: 1, 1, 8>}]} {
    %c0_i32 = arith.constant 0 : i32
    %0 = arith.cmpi eq, %arg1, %c0_i32 : i32
    %1 = arith.extui %0 : i1 to i32
    %c0_i32_0 = arith.constant 0 : i32
    %2 = arith.cmpi ne, %1, %c0_i32_0 : i32
    scf.if %2 {
      %cst_19 = arith.constant 0.000000e+00 : f32
      %19 = vector.broadcast %cst_19 : f32 to vector<1x1x8xf32>
      %c0_20 = arith.constant 0 : index
      %c0_21 = arith.constant 0 : index
      %c0_22 = arith.constant 0 : index
      %20 = vector.load %arg3[%c0_20, %c0_21, %c0_22] : memref<1x1x8xf32, #tpu.memory_space<vmem>>, vector<1x1x8xf32>
      tpu.vector_store %arg3[%c0_20, %c0_21, %c0_22], %19 {strides = array<i32>} : memref<1x1x8xf32, #tpu.memory_space<vmem>>, vector<1x1x8xf32>,
      %cst_23 = arith.constant 0.000000e+00 : f32
      %21 = vector.broadcast %cst_23 : f32 to vector<1x1x8xf32>
      %c0_24 = arith.constant 0 : index
      %c0_25 = arith.constant 0 : index
      %c0_26 = arith.constant 0 : index
      %22 = vector.load %arg4[%c0_24, %c0_25, %c0_26] : memref<1x1x8xf32, #tpu.memory_space<vmem>>, vector<1x1x8xf32>
      tpu.vector_store %arg4[%c0_24, %c0_25, %c0_26], %21 {strides = array<i32>} : memref<1x1x8xf32, #tpu.memory_space<vmem>>, vector<1x1x8xf32>,
    } else {
    }
    %c0 = arith.constant 0 : index
    %c0_1 = arith.constant 0 : index
    %c0_2 = arith.constant 0 : index
    %c0_3 = arith.constant 0 : index
    %3 = vector.load %arg2[%c0, %c0_1, %c0_2, %c0_3] : memref<4x2x8x8xf32, #tpu.memory_space<vmem>>, vector<4x2x8x8xf32>
    %cst = arith.constant dense<0.000000e+00> : vector<8x8xf32>
    %4 = vector.multi_reduction <add>, %3, %cst [0, 1] : vector<4x2x8x8xf32> to vector<8x8xf32>
    %5 = arith.mulf %3, %3 : vector<4x2x8x8xf32>
    %cst_4 = arith.constant dense<0.000000e+00> : vector<8x8xf32>
    %6 = vector.multi_reduction <add>, %5, %cst_4 [0, 1] : vector<4x2x8x8xf32> to vector<8x8xf32>
    %c0_5 = arith.constant 0 : index
    %c0_6 = arith.constant 0 : index
    %c0_7 = arith.constant 0 : index
    %7 = vector.load %arg3[%c0_5, %c0_6, %c0_7] : memref<1x1x8xf32, #tpu.memory_space<vmem>>, vector<1x1x8xf32>
    %cst_8 = arith.constant dense<0.000000e+00> : vector<8xf32>
    %8 = vector.multi_reduction <add>, %4, %cst_8 [0] : vector<8x8xf32> to vector<8xf32>
    %9 = vector.shape_cast %8 : vector<8xf32> to vector<1x8xf32>
    %10 = vector.shape_cast %9 : vector<1x8xf32> to vector<1x1x8xf32>
    %11 = arith.addf %7, %10 : vector<1x1x8xf32>
    %c0_9 = arith.constant 0 : index
    %c0_10 = arith.constant 0 : index
    %c0_11 = arith.constant 0 : index
    %12 = vector.load %arg3[%c0_9, %c0_10, %c0_11] : memref<1x1x8xf32, #tpu.memory_space<vmem>>, vector<1x1x8xf32>
    tpu.vector_store %arg3[%c0_9, %c0_10, %c0_11], %11 {strides = array<i32>} : memref<1x1x8xf32, #tpu.memory_space<vmem>>, vector<1x1x8xf32>,
    %c0_12 = arith.constant 0 : index
    %c0_13 = arith.constant 0 : index
    %c0_14 = arith.constant 0 : index
    %13 = vector.load %arg4[%c0_12, %c0_13, %c0_14] : memref<1x1x8xf32, #tpu.memory_space<vmem>>, vector<1x1x8xf32>
    %cst_15 = arith.constant dense<0.000000e+00> : vector<8xf32>
    %14 = vector.multi_reduction <add>, %6, %cst_15 [0] : vector<8x8xf32> to vector<8xf32>
    %15 = vector.shape_cast %14 : vector<8xf32> to vector<1x8xf32>
    %16 = vector.shape_cast %15 : vector<1x8xf32> to vector<1x1x8xf32>
    %17 = arith.addf %13, %16 : vector<1x1x8xf32>
    %c0_16 = arith.constant 0 : index
    %c0_17 = arith.constant 0 : index
    %c0_18 = arith.constant 0 : index
    %18 = vector.load %arg4[%c0_16, %c0_17, %c0_18] : memref<1x1x8xf32, #tpu.memory_space<vmem>>, vector<1x1x8xf32>
    tpu.vector_store %arg4[%c0_16, %c0_17, %c0_18], %17 {strides = array<i32>} : memref<1x1x8xf32, #tpu.memory_space<vmem>>, vector<1x1x8xf32>,
    return
  }
  func.func @transform_0(%arg0: i32, %arg1: i32) -> (i32, i32, i32, i32) {
    %c2_i32 = arith.constant 2 : i32
    %0 = arith.muli %arg0, %c2_i32 : i32
    %1 = arith.addi %0, %arg1 : i32
    %c0_i32 = arith.constant 0 : i32
    %c0_i32_0 = arith.constant 0 : i32
    %c0_i32_1 = arith.constant 0 : i32
    %c0_i32_2 = arith.constant 0 : i32
    return %1, %c0_i32, %c0_i32_0, %c0_i32_1 : i32, i32, i32, i32
  }
  func.func @transform_1(%arg0: i32, %arg1: i32) -> (i32, i32, i32) {
    %c0_i32 = arith.constant 0 : i32
    %c0_i32_0 = arith.constant 0 : i32
    %c0_i32_1 = arith.constant 0 : i32
    return %arg0, %c0_i32, %c0_i32_0 : i32, i32, i32
  }
  func.func @transform_2(%arg0: i32, %arg1: i32) -> (i32, i32, i32) {
    %c0_i32 = arith.constant 0 : i32
    %c0_i32_0 = arith.constant 0 : i32
    %c0_i32_1 = arith.constant 0 : i32
    return %arg0, %c0_i32, %c0_i32_0 : i32, i32, i32
  }
}

</mosaic_0001>

<bundles_post_ra>
// kernel: tpu_custom_call.1
= control target key start
LH: loop header
LB: loop body
LE: loop exit
PB: predicated region body
PF: predicated region fallthrough
CT: control target
= control target key end

     0   :  { %8 = vsyncpa [#allocation3], 0  ;;  %s820_s0 = inlined_call_operand.vmem [shape: f32[16,2,8,8], index: 0, kind: input, shape index: {}]   ;;  %s821_s1 = inlined_call_operand.hbm [shape: f32[2,1,8], index: 1, kind: output, shape index: {0}]   ;;  %s822_s2 = inlined_call_operand.hbm [shape: f32[2,1,8], index: 2, kind: output, shape index: {1}]  }
   0x1   :  { %10 = vsyncpa [#allocation3 + $0x1], 0 }
   0x2   :  { %11 = vsyncpa [#allocation5], 0 }
   0x3   :  { %13 = vsyncpa [#allocation5 + $0x1], 0  ;;  %s617_s9 = smov 0   ;;  %s619_s10 = smov 0  }
   0x4   :  { %s621_s11 = smov 0   ;;  %s623_s12 = smov 0  }
   0x5   :  { %s625_s13 = smov 0   ;;  %s627_s14 = smov 0  }
   0x6   :  { %s629_s15 = smov 0   ;;  %s631_s16 = smov 0  }
   0x7 LB: > { %s381_s17 = sadd.s32 4294967295, %s597_s16   ;;  %s382_s18 = sadd.s32 4294967294, %s597_s16   ;;  %s597_s16 = sphi %s631_s16, %s19_s16   ;;  %s593_s15 = sphi %s629_s15, %s831_s15   ;;  %s589_s14 = sphi %s627_s14, %s830_s14   ;;  %s585_s13 = sphi %s625_s13, %s829_s13   ;;  %s581_s12 = sphi %s623_s12, %s828_s12   ;;  %s577_s11 = sphi %s621_s11, %s827_s11   ;;  %s573_s10 = sphi %s619_s10, %s826_s10   ;;  %s569_s9 = sphi %s617_s9, %s825_s9  }
   0x8   : > { %s28_s19 = sadd.s32 1, %s589_s14  ;;  %s31_s20 = sadd.s32 1, %s593_s15 }
   0x9   : > { %p29_p0 = scmp.ge.s32.totalorder %s28_s19, 2  ;;  %p78_p1 = scmp.ne.s32.totalorder %s577_s11, %s573_s10 }
   0xa   : > { %p79_p2 = scmp.eq.s32.totalorder %s381_s17, 3  ;;  %p84_p4 = scmp.ne.s32.totalorder %s573_s10, %s569_s9 }
   0xb   : > { %s833_s19 = smov (%p29_p0, %s28_s19), 0  ;;  %s835_s20 = smov (!%p29_p0, %s31_s20), %s593_s15 }
   0xc   : > { %p666_p3 = por %p79_p2, %p78_p1  ;;  %p33_p5 = scmp.ge.s32.totalorder %s835_s20, 2 }
   0xd   : > { %p85_p6 = scmp.eq.s32.totalorder %s382_s18, 3  ;;  %p387_p7 = scmp.ge.s32.totalorder %s597_s16, 1 }
   0xe   : > { %p143_p8 = scmp.lt.s32.totalorder %s597_s16, 5  ;;  %s837_s20 = smov (%p33_p5, %s835_s20), 0 }
   0xf   : > { %p676_p9 = por %p85_p6, %p84_p4  ;;  %s65_s23 = ssub.s32 %s593_s15, %s837_s20 }
  0x10   : > { %p144_p10 = pnand %p387_p7, %p143_p8  ;;  %s68_s24 = sadd.s32 1, %s577_s11 }
  0x11   : > { %p66_p11 = scmp.eq.s32.totalorder %s65_s23, 0  ;;  %s687_s26 = sand.u32 (!%p144_p10), 1, %s573_s10  }
  0x12   : > { %147 = sbr.rel (%p144_p10) target bundleno = 97 (0x61), region = 24  ;;  %s388_s27 = sshll.u32 (!%p144_p10), %s585_s13, 1 }
  0x13   : > { %s684_s25 = scalar_select %p66_p11, %s577_s11, %s68_s24  }
  0x14   : > { %s172_s28 = sadd.s32 (!%p144_p10), %s581_s12, %s388_s27  ;;  %s697_s6 = scalar_lea.vmem (!%p144_p10), [#allocation2], %s687_s26 }
  0x15   : > { %s389_s29 = sshll.u32 (!%p144_p10), %s172_s28, 2  ;;  %s700_s7 = scalar_lea.vmem (!%p144_p10), [#allocation4], %s687_s26 }
  0x16   : > { %p174_p12 = scmp.lt.s32.totalorder (!%p144_p10), %s389_s29, 15  ;;  %p392_p13 = scmp.ne.s32.totalorder (!%p144_p10), %s581_s12, 0 }
  0x18   : > { %s839_s29 = smov (!%p174_p12, %s389_s29), 15  ;;  %185 = sbr.rel (%p392_p13) target bundleno = 31 (0x1f), region = 28 }
  0x19   : > { %s397_s30 = sshll.u32 %s839_s29, 4 }
  0x1a   : > { %s694_s5 = scalar_lea.vmem %s820_s0, %s397_s30 }
  0x1d   : > { %vm186_vm0 = vcmask 57344   ;;  %v599_v0 = vmov 0.0  }
  0x1e   : > { %187 = vst.msk [vmem:[%s697_s6] sm:$0x1] %vm186_vm0, %v599_v0  ;;  %188 = vst.msk [vmem:[%s700_s7] sm:$0x1] %vm186_vm0, %v599_v0 }
  0x1f PF: > { %v189_v1 = vld [vmem:[%s694_s5] sm:$0xff]  ;;  %v190_v2 = vld [vmem:[%s694_s5 + $0x8] sm:$0xff]  ;;  %v191_v3 = vld [vmem:[%s694_s5 + $0x10] sm:$0xff]  ;;  %vm197_vm1 = vcmask 64512   ;;  %s393_s8 = sshll.u32 %s585_s13, 4  ;;  %s274_s12 = sshll.u32 %s697_s6, 4  ;;  %s739_s12 = int_to_ptr.vmem [resolvable:$true] %s274_s12 }
  0x20   : > { %v192_v4 = vld [vmem:[%s694_s5 + $0x18] sm:$0xff]  ;;  %v198_v5 = vsel %vm197_vm1, %v189_v1, 0.0  ;;  %v199_v6 = vsel %vm197_vm1, %v190_v2, 0.0  ;;  %v201_v7 = vsel %vm197_vm1, %v191_v3, 0.0  ;;  %v213_v8 = vmul.f32 %v189_v1, %v189_v1  ;;  %v193_v9 = vld [vmem:[%s694_s5 + $0x20] sm:$0xff]  ;;  %v194_v14 = vld [vmem:[%s694_s5 + $0x28] sm:$0xff]  ;;  %s737_s23 = scalar_lea.hbm %s821_s1, %s393_s8  ;;  %s748_s28 = scalar_lea.hbm %s822_s2, %s393_s8 }
  0x21   : > { %v200_v10 = vadd.f32 %v199_v6, %v198_v5  ;;  %v203_v11 = vsel %vm197_vm1, %v192_v4, 0.0  ;;  %v214_v12 = vmul.f32 %v190_v2, %v190_v2  ;;  %v215_v13 = vmul.f32 %v191_v3, %v191_v3  ;;  %v195_v21 = vld [vmem:[%s694_s5 + $0x30] sm:$0xff]  ;;  %v196_v28 = vld [vmem:[%s694_s5 + $0x38] sm:$0xff]  ;;  %s287_s24 = sshll.u32 %s700_s7, 4  ;;  %s258_s29 = scalar_lea.sflag [#allocation3], %s687_s26  ;;  %s288_s24 = int_to_ptr.vmem [resolvable:$true] %s287_s24 }
  0x22   : > { %v216_v16 = vmul.f32 %v192_v4, %v192_v4  ;;  %v205_v17 = vsel %vm197_vm1, %v193_v9, 0.0  ;;  %v217_v18 = vmul.f32 %v193_v9, %v193_v9  ;;  %v221_v19 = vsel %vm197_vm1, %v213_v8, 0.0  ;;  %s475_s30 = scalar_lea.vmem %s739_s12, 16  ;;  %s600_s3 = smov [#allocation2]  }
  0x23   : > { %v202_v15 = vadd.f32 %v201_v7, %v200_v10  ;;  %v222_v20 = vsel %vm197_vm1, %v214_v12, 0.0  ;;  %v224_v24 = vsel %vm197_vm1, %v215_v13, 0.0  ;;  %v207_v25 = vsel %vm197_vm1, %v194_v14, 0.0  ;;  %p476_p0 = scmp.ne.s32.totalorder %s739_s12, %s475_s30  ;;  %s479_s4 = sshll.u32 %s600_s3, 4  ;;  %s480_s4 = int_to_ptr.vmem [resolvable:$false] %s479_s4 }
  0x24   : > { %v223_v23 = vadd.f32 %v222_v20, %v221_v19  ;;  %v218_v26 = vmul.f32 %v194_v14, %v194_v14  ;;  %v226_v27 = vsel %vm197_vm1, %v216_v16, 0.0  ;;  %v209_v31 = vsel %vm197_vm1, %v195_v21, 0.0  ;;  %s481_s5 = scalar_lea.vmem %s480_s4, 32  ;;  %p482_p4 = scmp.lt.s32.totalorder %s739_s12, %s480_s4 }
  0x25   : > { %v204_v22 = vadd.f32 %v203_v11, %v202_v15  ;;  %v219_v32 = vmul.f32 %v195_v21, %v195_v21  ;;  %v228_v33 = vsel %vm197_vm1, %v217_v18, 0.0  ;;  %v211_v36 = vsel %vm197_vm1, %v196_v28, 0.0  ;;  %v236_v57 = vld [vmem:[%s697_s6] sm:$0x1]  ;;  %p477_p1 = pnand %p476_p0, %p666_p3  ;;  %p483_p5 = scmp.lt.s32.totalorder %s481_s5, %s475_s30 }
  0x26   : > { %v225_v30 = vadd.f32 %v224_v24, %v223_v23  ;;  %v220_v37 = vmul.f32 %v196_v28, %v196_v28  ;;  %v230_v38 = vsel %vm197_vm1, %v218_v26, 0.0  ;;  %vm245_vm2 = vcmask 57344   ;;  %v247_v62 = vld [vmem:[%s700_s7] sm:$0x1] }
  0x27   : > { %v206_v29 = vadd.f32 %v205_v17, %v204_v22  ;;  %v232_v41 = vsel %vm197_vm1, %v219_v32, 0.0  ;;  %p478_p2 = pneg %p477_p1  ;;  %p484_p6 = por %p483_p5, %p482_p4 }
  0x28   : > { %v227_v35 = vadd.f32 %v226_v27, %v225_v30  ;;  %v234_v44 = vsel %vm197_vm1, %v220_v37, 0.0 }
  0x29   : > { %v208_v34 = vadd.f32 %v207_v25, %v206_v29  ;;  %p485_p7 = pnand %p484_p6, %p478_p2 }
  0x2a   : > { %v229_v40 = vadd.f32 %v228_v33, %v227_v35 }
  0x2b   : > { %v210_v39 = vadd.f32 %v209_v31, %v208_v34 }
  0x2c   : > { %v231_v43 = vadd.f32 %v230_v38, %v229_v40 }
  0x2d   : > { %v212_v42 = vadd.f32 %v211_v36, %v210_v39 }
  0x2e   : > { %v233_v46 = vadd.f32 %v232_v41, %v231_v43 }
  0x2f   : > { %v237_v45 = vsel %vm197_vm1, %v212_v42, 0.0 }
  0x30   : > { %v238_v47 = vrot.slane %v237_v45, 4  ;;  %v235_v48 = vadd.f32 %v234_v44, %v233_v46 }
  0x32   : > { %v239_v49 = vadd.f32 %v238_v47, %v237_v45  ;;  %v248_v50 = vsel %vm197_vm1, %v235_v48, 0.0 }
  0x33   : > { %v249_v52 = vrot.slane %v248_v50, 4 }
  0x34   : > { %v240_v51 = vrot.slane %v239_v49, 2 }
  0x35   : > { %v250_v54 = vadd.f32 %v249_v52, %v248_v50 }
  0x36   : > { %v241_v53 = vadd.f32 %v240_v51, %v239_v49 }
  0x37   : > { %v251_v56 = vrot.slane %v250_v54, 2 }
  0x38   : > { %v242_v55 = vrot.slane %v241_v53, 1 }
  0x39   : > { %v252_v59 = vadd.f32 %v251_v56, %v250_v54 }
  0x3a   : > { %v243_v58 = vadd.f32 %v242_v55, %v241_v53 }
  0x3b   : > { %v253_v61 = vrot.slane %v252_v59, 1 }
  0x3c   : > { %v244_v60 = vadd.f32 %v243_v58, %v236_v57 }
  0x3d   : > { %v254_v63 = vadd.f32 %v253_v61, %v252_v59 }
  0x3e   : > { %246 = vst.msk [vmem:[%s697_s6] sm:$0x1] %vm245_vm2, %v244_v60 }
  0x3f   : > { %488 = shalt.err (!%p485_p7)
}
  0x40   : > { %s489_s6 = scalar_lea.hbm %s737_s23, 16  ;;  %s493_s18 = scalar_lea.hbm %s821_s1, 32 }
  0x41   : > { %p490_p8 = scmp.ne.s32.totalorder %s737_s23, %s489_s6  ;;  %p494_p12 = scmp.lt.s32.totalorder %s737_s23, %s821_s1 }
  0x42   : > { %p495_p13 = scmp.lt.s32.totalorder %s493_s18, %s489_s6 }
  0x43   : > { %p491_p10 = pnand %p490_p8, %p666_p3 }
  0x44   : > { %p496_p0 = por %p495_p13, %p494_p12 }
  0x45   : > { %p492_p11 = pneg %p491_p10 }
  0x47   : > { %p497_p1 = pnand %p496_p0, %p492_p11 }
  0x49   : > { %500 = shalt.err (!%p497_p1)
}
  0x4a   : > { %398 = dma.vmem_to_hbm [thread:$0]  (%p666_p3), %s739_s12, 16, %s737_s23, %s258_s29   ;;  %v255_v0 = vadd.f32 %v254_v63, %v247_v62 }
  0x4b   : > { %s262_s30 = scalar_lea.sflag [#allocation5], %s687_s26  ;;  %s501_s3 = scalar_lea.vmem %s288_s24, 16 }
  0x4c   : > { %256 = vst.msk [vmem:[%s700_s7] sm:$0x1] %vm245_vm2, %v255_v0  ;;  %p502_p2 = scmp.ne.s32.totalorder %s288_s24, %s501_s3  ;;  %s601_s4 = smov [#allocation4]  }
  0x4d   : > { %s505_s5 = sshll.u32 %s601_s4, 4  ;;  %s506_s5 = int_to_ptr.vmem [resolvable:$false] %s505_s5 }
  0x4e   : > { %p503_p4 = pnand %p502_p2, %p666_p3  ;;  %s507_s6 = scalar_lea.vmem %s506_s5, 32 }
  0x4f   : > { %p508_p6 = scmp.lt.s32.totalorder %s288_s24, %s506_s5  ;;  %p509_p7 = scmp.lt.s32.totalorder %s507_s6, %s501_s3 }
  0x50   : > { %p504_p5 = pneg %p503_p4 }
  0x51   : > { %p510_p8 = por %p509_p7, %p508_p6 }
  0x53   : > { %p511_p10 = pnand %p510_p8, %p504_p5 }
  0x55   : > { %514 = shalt.err (!%p511_p10)
}
  0x56   : > { %s515_s7 = scalar_lea.hbm %s748_s28, 16  ;;  %s519_s23 = scalar_lea.hbm %s822_s2, 32 }
  0x57   : > { %p516_p11 = scmp.ne.s32.totalorder %s748_s28, %s515_s7  ;;  %p520_p0 = scmp.lt.s32.totalorder %s748_s28, %s822_s2 }
  0x58   : > { %p521_p1 = scmp.lt.s32.totalorder %s519_s23, %s515_s7 }
  0x59   : > { %p517_p12 = pnand %p516_p11, %p666_p3 }
  0x5a   : > { %p522_p2 = por %p521_p1, %p520_p0 }
  0x5b   : > { %p518_p13 = pneg %p517_p12 }
  0x5d   : > { %p523_p4 = pnand %p522_p2, %p518_p13 }
  0x5f   : > { %526 = shalt.err (!%p523_p4)
}
  0x60   : > { %399 = dma.vmem_to_hbm [thread:$0]  (%p666_p3), %s288_s24, 16, %s748_s28, %s262_s30  }
  0x61 PF: > { %p409_p5 = scmp.ge.s32.totalorder %s597_s16, 2  ;;  %s299_s17 = sand.u32 1, %s569_s9  }
  0x62   : > { %s300_s18 = scalar_lea.sflag [#allocation3], %s299_s17 }
  0x63   : > { %p403_p6 = pnand %p409_p5, %p676_p9 }
  0x65   : > { %p404_p7 = pneg %p403_p6 }
  0x67   : > { %560 = dma.done.wait (%p404_p7), %s300_s18, 16  }
  0x68   : > { %562 = vsyncadd (%p404_p7), %s300_s18, 4294967280  ;;  %s308_s13 = scalar_lea.sflag [#allocation5], %s299_s17 }
  0x69   : > { %564 = dma.done.wait (%p404_p7), %s308_s13, 16  }
  0x6a   : > { %566 = vsyncadd (%p404_p7), %s308_s13, 4294967280  ;;  %s19_s16 = sadd.s32 1, %s597_s16   ;;  %s825_s9 = smov %s573_s10 }
  0x6b   : > { %p16_p8 = scmp.ge.s32.totalorder %s19_s16, 6   ;;  %s826_s10 = smov %s577_s11 }
  0x6c   : > { %s827_s11 = smov %s684_s25  ;;  %s828_s12 = smov %s589_s14 }
  0x6d   : > { %s829_s13 = smov %s593_s15  ;;  %s830_s14 = smov %s833_s19 }
  0x6e   : > { %s831_s15 = smov %s837_s20  ;;  %18 = sbr.rel (!%p16_p8) target bundleno = 7 (0x7), region = 80 }
  0x73   :  { %312 = vsyncpa [#allocation3], 1 }
  0x74   :  { %314 = vsyncpa [#allocation3 + $0x1], 1 }
  0x75   :  { %315 = vsyncpa [#allocation5], 1 }
  0x76   :  { %317 = vsyncpa [#allocation5 + $0x1], 1 }

</bundles_post_ra>
